<compile_context>
chip_gen: v6e
topology: v6e:2x2x1
jax: 0.10.0
libtpu: 0.0.40
codegen_flags: <defaults>
</compile_context>

<pallas_src>
import functools

import jax
import jax.numpy as jnp
from jax.experimental import pallas as pl
from jax.experimental.pallas import tpu as pltpu

EPS = 1e-5          # nn.BatchNorm1d default eps


# ----------------------------- Pallas kernels ------------------------------ #

def _conv1_kernel(xc_ref, w1_ref, y1_ref, s1_ref, q1_ref):
    """y1 = conv1(x) via one matmul on the host-built tap-concat; partial BN1 stats."""
    y = jnp.dot(xc_ref[...], w1_ref[...], preferred_element_type=jnp.float32)
    y1_ref[...] = y.astype(y1_ref.dtype)
    s1_ref[...] = jnp.broadcast_to(jnp.sum(y, axis=0, keepdims=True), s1_ref.shape)
    q1_ref[...] = jnp.broadcast_to(jnp.sum(y * y, axis=0, keepdims=True), q1_ref.shape)


def _conv1_proj_kernel(xc_ref, w1_ref, wsc_ref,
                       y1_ref, ysc_ref, s1_ref, q1_ref, ssc_ref, qsc_ref, *, c_in):
    """conv1 + fused 1x1/stride shortcut conv, plus partial BN stats for both."""
    xc = xc_ref[...]                                              # (tl, 3*Cin)
    y = jnp.dot(xc, w1_ref[...], preferred_element_type=jnp.float32)
    y1_ref[...] = y.astype(y1_ref.dtype)
    s1_ref[...] = jnp.broadcast_to(jnp.sum(y, axis=0, keepdims=True), s1_ref.shape)
    q1_ref[...] = jnp.broadcast_to(jnp.sum(y * y, axis=0, keepdims=True), q1_ref.shape)

    # center tap of the tap-concat == x[n, :, l*stride], exactly the 1x1-conv input.
    xm = xc[:, c_in:2 * c_in]
    ysc = jnp.dot(xm, wsc_ref[...], preferred_element_type=jnp.float32)
    ysc_ref[...] = ysc.astype(ysc_ref.dtype)
    ssc_ref[...] = jnp.broadcast_to(jnp.sum(ysc, axis=0, keepdims=True), ssc_ref.shape)
    qsc_ref[...] = jnp.broadcast_to(jnp.sum(ysc * ysc, axis=0, keepdims=True), qsc_ref.shape)


def _bnrelu_conv2_kernel(y1w_ref, sc1_ref, sh1_ref, w2_ref,
                         y2_ref, s2_ref, q2_ref, *, tl, l1, c):
    """h = relu(bn1(y1)) on a (tl+2)-row halo window; y2 = conv2(h); partial BN2 stats."""
    li = pl.program_id(1)

    h = y1w_ref[...].astype(jnp.float32) * sc1_ref[...] + sh1_ref[...]   # (tl+2, C)
    h = jnp.maximum(h, 0.0)
    # conv2 zero-pads in h-space: halo rows falling outside [0, l1) must be exact zeros.
    rows = jax.lax.broadcasted_iota(jnp.int32, (tl + 2, 1), 0) + li * tl
    h = jnp.where((rows >= 1) & (rows <= l1), h, 0.0)

    w2 = w2_ref[...]                                                     # (3*C, C)
    y = jnp.dot(h[0:tl], w2[0:c], preferred_element_type=jnp.float32)
    y = y + jnp.dot(h[1:tl + 1], w2[c:2 * c], preferred_element_type=jnp.float32)
    y = y + jnp.dot(h[2:tl + 2], w2[2 * c:3 * c], preferred_element_type=jnp.float32)

    y2_ref[...] = y.astype(y2_ref.dtype)
    s2_ref[...] = jnp.broadcast_to(jnp.sum(y, axis=0, keepdims=True), s2_ref.shape)
    q2_ref[...] = jnp.broadcast_to(jnp.sum(y * y, axis=0, keepdims=True), q2_ref.shape)


def _final_proj_kernel(y2_ref, sc2_ref, sh2_ref, ysc_ref, scs_ref, shs_ref, o_ref):
    """out = relu(bn2(y2) + bn_sc(ysc))"""
    main = y2_ref[...].astype(jnp.float32) * sc2_ref[...] + sh2_ref[...]
    sc = ysc_ref[...].astype(jnp.float32) * scs_ref[...] + shs_ref[...]
    o_ref[...] = jnp.maximum(main + sc, 0.0)


def _final_id_kernel(y2_ref, sc2_ref, sh2_ref, x_ref, o_ref):
    """out = relu(bn2(y2) + x)"""
    main = y2_ref[...].astype(jnp.float32) * sc2_ref[...] + sh2_ref[...]
    o_ref[...] = jnp.maximum(main + x_ref[...], 0.0)


# ------------------------------ JAX glue ----------------------------------- #

def _bn_scale_shift(s, q, count, gamma, beta):
    """Fold per-channel batch sums into an affine (scale, shift): each (1, C) f32."""
    mean = s / count
    var = jnp.maximum(q / count - mean * mean, 0.0)     # biased (train-mode) variance
    scale = gamma * jax.lax.rsqrt(var + EPS)
    shift = beta - mean * scale
    return scale.reshape(1, -1), shift.reshape(1, -1)


def _pick_tile_l(l1, c_in, c_out, tile_l=None):
    """Pick an L-tile that divides l1 and is a multiple of 8 (or the full length)."""
    if tile_l is not None:
        if l1 % tile_l or not (tile_l % 8 == 0 or tile_l == l1):
            raise ValueError(f"bad tile_l={tile_l} for l1={l1}")
        return tile_l
    # ~2 MiB of activation tile per buffer; halve again on v7x (64 MiB VMEM) if needed.
    per_row_bytes = 4 * 3 * c_in + 2 * 4 * c_out + 4 * 2 * c_out
    target = (2 << 20) // max(per_row_bytes, 1)
    target = max(8, min(2048, target)) // 8 * 8
    if l1 <= target:
        return l1
    for t in range(target, 7, -8):
        if l1 % t == 0:
            return t
    return l1   # TODO(synk): pad l1 to a friendly multiple instead of a full-length tile.


def typical_residual_block(x, params, stride, tile_l=None):
    """x: (N, Cin, L) float32 -> (N, Cout, L_out) float32 (PyTorch NCL layout)."""
    n, c_in, l = x.shape
    c_out = params["w1"].shape[0]
    l1 = (l + 2 - 3) // stride + 1
    has_proj = (stride != 1) or (c_in != c_out)

    tl = _pick_tile_l(l1, c_in, c_out, tile_l)
    n_lt = l1 // tl

    # ---- host-side layout (one pass): NCL -> NLC, halo pad, 3-tap concat --------
    # TODO(synk): fuse this transpose/pad into kernel 1 (in-kernel einshape) for large Cin.
    x_nlc = jnp.transpose(x, (0, 2, 1)).astype(jnp.float32)             # (N, L, Cin)
    xpad = jnp.pad(x_nlc, ((0, 0), (1, 1), (0, 0)))                     # (N, L+2, Cin)
    taps = [xpad[:, k:k + (l1 - 1) * stride + 1:stride, :] for k in range(3)]
    x_cat = jnp.concatenate(taps, axis=-1)                              # (N, L1, 3*Cin)

    # PyTorch conv weights -> matmul matrices (tap-major along the contraction dim).
    w1m = jnp.transpose(params["w1"], (2, 1, 0)).reshape(3 * c_in, c_out)
    w2m = jnp.transpose(params["w2"], (2, 1, 0)).reshape(3 * c_out, c_out)

    grid = (n, n_lt)
    par = pltpu.CompilerParams(dimension_semantics=("parallel", "parallel"))

    xcat_spec = pl.BlockSpec((None, tl, 3 * c_in), lambda i, j: (i, j, 0))
    y_spec = pl.BlockSpec((None, tl, c_out), lambda i, j: (i, j, 0))
    stat_spec = pl.BlockSpec((None, None, 8, c_out), lambda i, j: (i, j, 0, 0))
    win_spec = pl.BlockSpec((None, None, tl + 2, c_out), lambda i, j: (i, j, 0, 0))
    w1_spec = pl.BlockSpec((3 * c_in, c_out), lambda i, j: (0, 0))
    w2_spec = pl.BlockSpec((3 * c_out, c_out), lambda i, j: (0, 0))
    wsc_spec = pl.BlockSpec((c_in, c_out), lambda i, j: (0, 0))
    vec_spec = pl.BlockSpec((1, c_out), lambda i, j: (0, 0))

    y_shape = jax.ShapeDtypeStruct((n, l1, c_out), jnp.bfloat16)        # bf16 intermediates
    stat_shape = jax.ShapeDtypeStruct((n, n_lt, 8, c_out), jnp.float32)
    out_shape = jax.ShapeDtypeStruct((n, l1, c_out), jnp.float32)

    count = float(n * l1)

    def tot(st):                                   # (N, n_lt, 8, C) partials -> (C,)
        return jnp.sum(st[:, :, 0, :], axis=(0, 1))

    # ---- kernel 1: conv1 (+ fused shortcut conv) + partial BN stats -------------
    if has_proj:
        wscm = jnp.transpose(params["wsc"][:, :, 0])                    # (Cin, Cout)
        y1, ysc, s1, q1, ssc, qsc = pl.pallas_call(
            functools.partial(_conv1_proj_kernel, c_in=c_in),
            grid=grid,
            in_specs=[xcat_spec, w1_spec, wsc_spec],
            out_specs=(y_spec, y_spec, stat_spec, stat_spec, stat_spec, stat_spec),
            out_shape=(y_shape, y_shape, stat_shape, stat_shape, stat_shape, stat_shape),
            compiler_params=par,
        )(x_cat, w1m, wscm)
    else:
        y1, s1, q1 = pl.pallas_call(
            _conv1_kernel,
            grid=grid,
            in_specs=[xcat_spec, w1_spec],
            out_specs=(y_spec, stat_spec, stat_spec),
            out_shape=(y_shape, stat_shape, stat_shape),
            compiler_params=par,
        )(x_cat, w1m)

    scale1, shift1 = _bn_scale_shift(tot(s1), tot(q1), count, params["g1"], params["b1"])

    # y1 halo windows: (N, n_lt, tl+2, C), zero rows at the sequence ends
    # (zeroed again in h-space in-kernel).
    y1p = jnp.pad(y1, ((0, 0), (1, 1), (0, 0)))
    y1w = jnp.stack([y1p[:, j * tl:j * tl + tl + 2, :] for j in range(n_lt)], axis=1)

    # ---- kernel 2: bn1 + relu + conv2 + partial BN2 stats -----------------------
    y2, s2, q2 = pl.pallas_call(
        functools.partial(_bnrelu_conv2_kernel, tl=tl, l1=l1, c=c_out),
        grid=grid,
        in_specs=[win_spec, vec_spec, vec_spec, w2_spec],
        out_specs=(y_spec, stat_spec, stat_spec),
        out_shape=(y_shape, stat_shape, stat_shape),
        compiler_params=par,
    )(y1w, scale1, shift1, w2m)

    scale2, shift2 = _bn_scale_shift(tot(s2), tot(q2), count, params["g2"], params["b2"])

    # ---- kernel 3: bn2 + shortcut(+bn_sc) + residual add + relu -----------------
    if has_proj:
        scale_sc, shift_sc = _bn_scale_shift(tot(ssc), tot(qsc), count,
                                             params["gsc"], params["bsc"])
        out_nlc = pl.pallas_call(
            _final_proj_kernel,
            grid=grid,
            in_specs=[y_spec, vec_spec, vec_spec, y_spec, vec_spec, vec_spec],
            out_specs=y_spec,
            out_shape=out_shape,
            compiler_params=par,
        )(y2, scale2, shift2, ysc, scale_sc, shift_sc)
    else:
        x_spec = pl.BlockSpec((None, tl, c_in), lambda i, j: (i, j, 0))
        out_nlc = pl.pallas_call(
            _final_id_kernel,
            grid=grid,
            in_specs=[y_spec, vec_spec, vec_spec, x_spec],
            out_specs=y_spec,
            out_shape=out_shape,
            compiler_params=par,
        )(y2, scale2, shift2, x_nlc)

    return jnp.transpose(out_nlc, (0, 2, 1))             # back to PyTorch NCL


# --------------------------- pure-JAX reference ----------------------------- #

def _conv1d_ref(x, w, stride, padding):
    return jax.lax.conv_general_dilated(
        x, w, window_strides=(stride,), padding=[(padding, padding)],
        dimension_numbers=("NCH", "OIH", "NCH"))


def _bn_ref(y, gamma, beta):
    mean = jnp.mean(y, axis=(0, 2), keepdims=True)
    var = jnp.mean((y - mean) ** 2, axis=(0, 2), keepdims=True)
    return (y - mean) * jax.lax.rsqrt(var + EPS) * gamma[None, :, None] + beta[None, :, None]


def reference_block(x, params, stride):
    c_in = x.shape[1]
    c_out = params["w1"].shape[0]
    out = jnp.maximum(_bn_ref(_conv1d_ref(x, params["w1"], stride, 1),
                              params["g1"], params["b1"]), 0.0)
    out = _bn_ref(_conv1d_ref(out, params["w2"], 1, 1), params["g2"], params["b2"])
    if stride != 1 or c_in != c_out:
        sc = _bn_ref(_conv1d_ref(x, params["wsc"], stride, 0),
                     params["gsc"], params["bsc"])
    else:
        sc = x
    return jnp.maximum(out + sc, 0.0)


# ---------------------------------- main ------------------------------------ #

if __name__ == "__main__":
    key = jax.random.PRNGKey(0)
    ks = jax.random.split(key, 8)

    # ---- Block A: projection shortcut (stride=2, channel change), multi-tile L ----
    N, C_IN, C_OUT, L, STRIDE = 2, 4, 8, 32, 2
    x = jax.random.normal(ks[0], (N, C_IN, L), jnp.float32)
    params = {
        "w1": jax.random.normal(ks[1], (C_OUT, C_IN, 3), jnp.float32) * 0.1,
        "g1": jnp.full((C_OUT,), 1.1, jnp.float32),
        "b1": jnp.full((C_OUT,), 0.05, jnp.float32),
        "w2": jax.random.normal(ks[2], (C_OUT, C_OUT, 3), jnp.float32) * 0.1,
        "g2": jnp.full((C_OUT,), 0.9, jnp.float32),
        "b2": jnp.full((C_OUT,), -0.02, jnp.float32),
        "wsc": jax.random.normal(ks[3], (C_OUT, C_IN, 1), jnp.float32) * 0.1,
        "gsc": jnp.ones((C_OUT,), jnp.float32),
        "bsc": jnp.zeros((C_OUT,), jnp.float32),
    }
    out = jax.block_until_ready(typical_residual_block(x, params, STRIDE, tile_l=8))
    ref = jax.block_until_ready(reference_block(x, params, STRIDE))
    assert out.shape == ref.shape, (out.shape, ref.shape)
    err = float(jnp.max(jnp.abs(out - ref)))
    # bf16 intermediates + DEFAULT-precision MXU matmuls on both sides -> loose abs tol.
    assert err < 5e-2, err
    assert bool(jnp.all(jnp.isfinite(out)))

    # ---- Block B: identity shortcut (stride=1, same channels), multi-tile L -------
    C, L2 = 8, 32
    x2 = jax.random.normal(ks[4], (N, C, L2), jnp.float32)
    params2 = {
        "w1": jax.random.normal(ks[5], (C, C, 3), jnp.float32) * 0.1,
        "g1": jnp.full((C,), 1.05, jnp.float32),
        "b1": jnp.full((C,), 0.03, jnp.float32),
        "w2": jax.random.normal(ks[6], (C, C, 3), jnp.float32) * 0.1,
        "g2": jnp.full((C,), 0.95, jnp.float32),
        "b2": jnp.full((C,), -0.01, jnp.float32),
    }
    out2 = jax.block_until_ready(typical_residual_block(x2, params2, 1, tile_l=8))
    ref2 = jax.block_until_ready(reference_block(x2, params2, 1))
    assert out2.shape == ref2.shape, (out2.shape, ref2.shape)
    err2 = float(jnp.max(jnp.abs(out2 - ref2)))
    assert err2 < 5e-2, err2
    assert bool(jnp.all(jnp.isfinite(out2)))

    print("KERNEL_OK")
</pallas_src>

<mosaic_0001>
module attributes {stable_mosaic.version = 11 : i64} {
  func.func @_conv1_proj_kernel(%arg0: i32, %arg1: i32, %arg2: memref<1x8x12xf32, #tpu.memory_space<vmem>>, %arg3: memref<12x8xf32, #tpu.memory_space<vmem>>, %arg4: memref<4x8xf32, #tpu.memory_space<vmem>>, %arg5: memref<1x8x8xbf16, #tpu.memory_space<vmem>>, %arg6: memref<1x8x8xbf16, #tpu.memory_space<vmem>>, %arg7: memref<1x1x8x8xf32, #tpu.memory_space<vmem>>, %arg8: memref<1x1x8x8xf32, #tpu.memory_space<vmem>>, %arg9: memref<1x1x8x8xf32, #tpu.memory_space<vmem>>, %arg10: memref<1x1x8x8xf32, #tpu.memory_space<vmem>>) attributes {dimension_semantics = [#tpu.dimension_semantics<parallel>, #tpu.dimension_semantics<parallel>], iteration_bounds = array<i64: 2, 2>, scalar_prefetch = 0 : i64, scratch_operands = 0 : i64, tpu.core_type = #tpu.core_type<tc>, window_params = [{transform_indices = @transform_0, window_bounds = array<i64: 1, 8, 12>}, {pipeline_mode = #tpu.pipeline_mode<synchronous>, transform_indices = @transform_1, window_bounds = array<i64: 12, 8>}, {pipeline_mode = #tpu.pipeline_mode<synchronous>, transform_indices = @transform_2, window_bounds = array<i64: 4, 8>}, {transform_indices = @transform_3, window_bounds = array<i64: 1, 8, 8>}, {transform_indices = @transform_4, window_bounds = array<i64: 1, 8, 8>}, {transform_indices = @transform_5, window_bounds = array<i64: 1, 1, 8, 8>}, {transform_indices = @transform_6, window_bounds = array<i64: 1, 1, 8, 8>}, {transform_indices = @transform_7, window_bounds = array<i64: 1, 1, 8, 8>}, {transform_indices = @transform_8, window_bounds = array<i64: 1, 1, 8, 8>}]} {
    %c0 = arith.constant 0 : index
    %c0_0 = arith.constant 0 : index
    %c0_1 = arith.constant 0 : index
    %0 = vector.load %arg2[%c0, %c0_0, %c0_1] : memref<1x8x12xf32, #tpu.memory_space<vmem>>, vector<1x8x12xf32>
    %1 = vector.shape_cast %0 : vector<1x8x12xf32> to vector<8x12xf32>
    %c0_2 = arith.constant 0 : index
    %c0_3 = arith.constant 0 : index
    %2 = vector.load %arg3[%c0_2, %c0_3] : memref<12x8xf32, #tpu.memory_space<vmem>>, vector<12x8xf32>
    %cst = arith.constant dense<0.000000e+00> : vector<8x8xf32>
    %3 = tpu.matmul %1, %2, %cst {dimension_numbers = #tpu.dot_dimension_numbers<[1], [0], [0], [1], [0, 0, 1, 1], [], []>} : vector<8x12xf32>, vector<12x8xf32>, vector<8x8xf32> -> vector<8x8xf32>
    %4 = arith.truncf %3 : vector<8x8xf32> to vector<8x8xbf16>
    %c0_4 = arith.constant 0 : index
    %c0_5 = arith.constant 0 : index
    %c0_6 = arith.constant 0 : index
    %5 = vector.load %arg5[%c0_4, %c0_5, %c0_6] : memref<1x8x8xbf16, #tpu.memory_space<vmem>>, vector<1x8x8xbf16>
    %6 = vector.shape_cast %5 : vector<1x8x8xbf16> to vector<8x8xbf16>
    %7 = vector.shape_cast %4 : vector<8x8xbf16> to vector<1x8x8xbf16>
    tpu.vector_store %arg5[%c0_4, %c0_5, %c0_6], %7 {strides = array<i32>} : memref<1x8x8xbf16, #tpu.memory_space<vmem>>, vector<1x8x8xbf16>,
    %cst_7 = arith.constant dense<0.000000e+00> : vector<8xf32>
    %8 = vector.multi_reduction <add>, %3, %cst_7 [0] : vector<8x8xf32> to vector<8xf32>
    %9 = vector.shape_cast %8 : vector<8xf32> to vector<1x8xf32>
    %10 = vector.shape_cast %9 : vector<1x8xf32> to vector<1x8xf32>
    %11 = vector.broadcast %10 : vector<1x8xf32> to vector<8x8xf32>
    %c0_8 = arith.constant 0 : index
    %c0_9 = arith.constant 0 : index
    %c0_10 = arith.constant 0 : index
    %c0_11 = arith.constant 0 : index
    %12 = vector.load %arg7[%c0_8, %c0_9, %c0_10, %c0_11] : memref<1x1x8x8xf32, #tpu.memory_space<vmem>>, vector<1x1x8x8xf32>
    %13 = vector.shape_cast %12 : vector<1x1x8x8xf32> to vector<8x8xf32>
    %14 = vector.shape_cast %11 : vector<8x8xf32> to vector<1x1x8x8xf32>
    tpu.vector_store %arg7[%c0_8, %c0_9, %c0_10, %c0_11], %14 {strides = array<i32>} : memref<1x1x8x8xf32, #tpu.memory_space<vmem>>, vector<1x1x8x8xf32>,
    %15 = arith.mulf %3, %3 : vector<8x8xf32>
    %cst_12 = arith.constant dense<0.000000e+00> : vector<8xf32>
    %16 = vector.multi_reduction <add>, %15, %cst_12 [0] : vector<8x8xf32> to vector<8xf32>
    %17 = vector.shape_cast %16 : vector<8xf32> to vector<1x8xf32>
    %18 = vector.shape_cast %17 : vector<1x8xf32> to vector<1x8xf32>
    %19 = vector.broadcast %18 : vector<1x8xf32> to vector<8x8xf32>
    %c0_13 = arith.constant 0 : index
    %c0_14 = arith.constant 0 : index
    %c0_15 = arith.constant 0 : index
    %c0_16 = arith.constant 0 : index
    %20 = vector.load %arg8[%c0_13, %c0_14, %c0_15, %c0_16] : memref<1x1x8x8xf32, #tpu.memory_space<vmem>>, vector<1x1x8x8xf32>
    %21 = vector.shape_cast %20 : vector<1x1x8x8xf32> to vector<8x8xf32>
    %22 = vector.shape_cast %19 : vector<8x8xf32> to vector<1x1x8x8xf32>
    tpu.vector_store %arg8[%c0_13, %c0_14, %c0_15, %c0_16], %22 {strides = array<i32>} : memref<1x1x8x8xf32, #tpu.memory_space<vmem>>, vector<1x1x8x8xf32>,
    %23 = vector.extract_strided_slice %1 {offsets = [0, 4], sizes = [8, 4], strides = [1, 1]} : vector<8x12xf32> to vector<8x4xf32>
    %c0_17 = arith.constant 0 : index
    %c0_18 = arith.constant 0 : index
    %24 = vector.load %arg4[%c0_17, %c0_18] : memref<4x8xf32, #tpu.memory_space<vmem>>, vector<4x8xf32>
    %cst_19 = arith.constant dense<0.000000e+00> : vector<8x8xf32>
    %25 = tpu.matmul %23, %24, %cst_19 {dimension_numbers = #tpu.dot_dimension_numbers<[1], [0], [0], [1], [0, 0, 1, 1], [], []>} : vector<8x4xf32>, vector<4x8xf32>, vector<8x8xf32> -> vector<8x8xf32>
    %26 = arith.truncf %25 : vector<8x8xf32> to vector<8x8xbf16>
    %c0_20 = arith.constant 0 : index
    %c0_21 = arith.constant 0 : index
    %c0_22 = arith.constant 0 : index
    %27 = vector.load %arg6[%c0_20, %c0_21, %c0_22] : memref<1x8x8xbf16, #tpu.memory_space<vmem>>, vector<1x8x8xbf16>
    %28 = vector.shape_cast %27 : vector<1x8x8xbf16> to vector<8x8xbf16>
    %29 = vector.shape_cast %26 : vector<8x8xbf16> to vector<1x8x8xbf16>
    tpu.vector_store %arg6[%c0_20, %c0_21, %c0_22], %29 {strides = array<i32>} : memref<1x8x8xbf16, #tpu.memory_space<vmem>>, vector<1x8x8xbf16>,
    %cst_23 = arith.constant dense<0.000000e+00> : vector<8xf32>
    %30 = vector.multi_reduction <add>, %25, %cst_23 [0] : vector<8x8xf32> to vector<8xf32>
    %31 = vector.shape_cast %30 : vector<8xf32> to vector<1x8xf32>
    %32 = vector.shape_cast %31 : vector<1x8xf32> to vector<1x8xf32>
    %33 = vector.broadcast %32 : vector<1x8xf32> to vector<8x8xf32>
    %c0_24 = arith.constant 0 : index
    %c0_25 = arith.constant 0 : index
    %c0_26 = arith.constant 0 : index
    %c0_27 = arith.constant 0 : index
    %34 = vector.load %arg9[%c0_24, %c0_25, %c0_26, %c0_27] : memref<1x1x8x8xf32, #tpu.memory_space<vmem>>, vector<1x1x8x8xf32>
    %35 = vector.shape_cast %34 : vector<1x1x8x8xf32> to vector<8x8xf32>
    %36 = vector.shape_cast %33 : vector<8x8xf32> to vector<1x1x8x8xf32>
    tpu.vector_store %arg9[%c0_24, %c0_25, %c0_26, %c0_27], %36 {strides = array<i32>} : memref<1x1x8x8xf32, #tpu.memory_space<vmem>>, vector<1x1x8x8xf32>,
    %37 = arith.mulf %25, %25 : vector<8x8xf32>
    %cst_28 = arith.constant dense<0.000000e+00> : vector<8xf32>
    %38 = vector.multi_reduction <add>, %37, %cst_28 [0] : vector<8x8xf32> to vector<8xf32>
    %39 = vector.shape_cast %38 : vector<8xf32> to vector<1x8xf32>
    %40 = vector.shape_cast %39 : vector<1x8xf32> to vector<1x8xf32>
    %41 = vector.broadcast %40 : vector<1x8xf32> to vector<8x8xf32>
    %c0_29 = arith.constant 0 : index
    %c0_30 = arith.constant 0 : index
    %c0_31 = arith.constant 0 : index
    %c0_32 = arith.constant 0 : index
    %42 = vector.load %arg10[%c0_29, %c0_30, %c0_31, %c0_32] : memref<1x1x8x8xf32, #tpu.memory_space<vmem>>, vector<1x1x8x8xf32>
    %43 = vector.shape_cast %42 : vector<1x1x8x8xf32> to vector<8x8xf32>
    %44 = vector.shape_cast %41 : vector<8x8xf32> to vector<1x1x8x8xf32>
    tpu.vector_store %arg10[%c0_29, %c0_30, %c0_31, %c0_32], %44 {strides = array<i32>} : memref<1x1x8x8xf32, #tpu.memory_space<vmem>>, vector<1x1x8x8xf32>,
    return
  }
  func.func @transform_0(%arg0: i32, %arg1: i32) -> (i32, i32, i32) {
    %c0_i32 = arith.constant 0 : i32
    %c0_i32_0 = arith.constant 0 : i32
    return %arg0, %arg1, %c0_i32 : i32, i32, i32
  }
  func.func @transform_1(%arg0: i32, %arg1: i32) -> (i32, i32) {
    %c0_i32 = arith.constant 0 : i32
    %c0_i32_0 = arith.constant 0 : i32
    %c0_i32_1 = arith.constant 0 : i32
    return %c0_i32, %c0_i32_0 : i32, i32
  }
  func.func @transform_2(%arg0: i32, %arg1: i32) -> (i32, i32) {
    %c0_i32 = arith.constant 0 : i32
    %c0_i32_0 = arith.constant 0 : i32
    %c0_i32_1 = arith.constant 0 : i32
    return %c0_i32, %c0_i32_0 : i32, i32
  }
  func.func @transform_3(%arg0: i32, %arg1: i32) -> (i32, i32, i32) {
    %c0_i32 = arith.constant 0 : i32
    %c0_i32_0 = arith.constant 0 : i32
    return %arg0, %arg1, %c0_i32 : i32, i32, i32
  }
  func.func @transform_4(%arg0: i32, %arg1: i32) -> (i32, i32, i32) {
    %c0_i32 = arith.constant 0 : i32
    %c0_i32_0 = arith.constant 0 : i32
    return %arg0, %arg1, %c0_i32 : i32, i32, i32
  }
  func.func @transform_5(%arg0: i32, %arg1: i32) -> (i32, i32, i32, i32) {
    %c0_i32 = arith.constant 0 : i32
    %c0_i32_0 = arith.constant 0 : i32
    %c0_i32_1 = arith.constant 0 : i32
    return %arg0, %arg1, %c0_i32, %c0_i32_0 : i32, i32, i32, i32
  }
  func.func @transform_6(%arg0: i32, %arg1: i32) -> (i32, i32, i32, i32) {
    %c0_i32 = arith.constant 0 : i32
    %c0_i32_0 = arith.constant 0 : i32
    %c0_i32_1 = arith.constant 0 : i32
    return %arg0, %arg1, %c0_i32, %c0_i32_0 : i32, i32, i32, i32
  }
  func.func @transform_7(%arg0: i32, %arg1: i32) -> (i32, i32, i32, i32) {
    %c0_i32 = arith.constant 0 : i32
    %c0_i32_0 = arith.constant 0 : i32
    %c0_i32_1 = arith.constant 0 : i32
    return %arg0, %arg1, %c0_i32, %c0_i32_0 : i32, i32, i32, i32
  }
  func.func @transform_8(%arg0: i32, %arg1: i32) -> (i32, i32, i32, i32) {
    %c0_i32 = arith.constant 0 : i32
    %c0_i32_0 = arith.constant 0 : i32
    %c0_i32_1 = arith.constant 0 : i32
    return %arg0, %arg1, %c0_i32, %c0_i32_0 : i32, i32, i32, i32
  }
}

</mosaic_0001>

<bundles_post_ra>
// kernel: tpu_custom_call.1
= control target key start
LH: loop header
LB: loop body
LE: loop exit
PB: predicated region body
PF: predicated region fallthrough
CT: control target
= control target key end

     0   :  { %s1611_s0 = inlined_call_operand.vmem [shape: f32[2,16,12], index: 0, kind: input, shape index: {}]   ;;  %s1612_s1 = inlined_call_operand.vmem [shape: f32[12,8], index: 1, kind: input, shape index: {}]   ;;  %s1613_s2 = inlined_call_operand.vmem [shape: f32[4,8], index: 2, kind: input, shape index: {}]   ;;  %s1614_s3 = inlined_call_operand.vmem [shape: bf16[2,16,8], index: 3, kind: output, shape index: {0}]   ;;  %s1615_s4 = inlined_call_operand.vmem [shape: bf16[2,16,8], index: 4, kind: output, shape index: {1}]   ;;  %s1616_s5 = inlined_call_operand.hbm [shape: f32[2,2,8,8], index: 5, kind: output, shape index: {2}]   ;;  %s1617_s6 = inlined_call_operand.hbm [shape: f32[2,2,8,8], index: 6, kind: output, shape index: {3}]   ;;  %s1618_s7 = inlined_call_operand.hbm [shape: f32[2,2,8,8], index: 7, kind: output, shape index: {4}]   ;;  %s1619_s8 = inlined_call_operand.hbm [shape: f32[2,2,8,8], index: 8, kind: output, shape index: {5}]  }
   0x1   :  { %1628 = sst [smem:[#allocation16_spill]] %s1611_s0 }
   0x2   :  { %1629 = sst [smem:[#allocation17_spill]] %s1612_s1 }
   0x3   :  { %1630 = sst [smem:[#allocation18_spill]] %s1613_s2 }
   0x4   :  { %1631 = sst [smem:[#allocation19_spill]] %s1614_s3 }
   0x5   :  { %14 = vsyncpa [#allocation3], 0 }
   0x6   :  { %16 = vsyncpa [#allocation3 + $0x1], 0 }
   0x7   :  { %17 = vsyncpa [#allocation5], 0 }
   0x8   :  { %19 = vsyncpa [#allocation5 + $0x1], 0 }
   0x9   :  { %20 = vsyncpa [#allocation8], 0 }
   0xa   :  { %22 = vsyncpa [#allocation8 + $0x1], 0  ;;  %s1321_s27 = smov 0   ;;  %s1323_s28 = smov 0  }
   0xb   :  { %s1325_s29 = smov 0   ;;  %s1327_s30 = smov 0  }
   0xc   :  { %s1329_s9 = smov 0   ;;  %s1331_s10 = smov 0  }
   0xd   :  { %s1333_s11 = smov 0   ;;  %s1335_s12 = smov 0  }
   0xe LB: > { %1632 = sst [smem:[#allocation12_spill]] %s1259_s10  ;;  %s1621_s13 = sadd.s32 4294967295, %s1267_s12   ;;  %s1267_s12 = sphi %s1335_s12, %s28_s12   ;;  %s1263_s11 = sphi %s1333_s11, %s1649_s11   ;;  %s1259_s10 = sphi %s1331_s10, %s1648_s10   ;;  %s1255_s9 = sphi %s1329_s9, %s1647_s9   ;;  %s1251_s30 = sphi %s1327_s30, %s1646_s30   ;;  %s1247_s29 = sphi %s1325_s29, %s1652_s29   ;;  %s1243_s28 = sphi %s1323_s28, %s1651_s28   ;;  %s1239_s27 = sphi %s1321_s27, %s1650_s27  }
   0xf   : > { %1633 = sst [smem:[#allocation13_spill]] %s1263_s11  ;;  %s1620_s14 = sadd.s32 4294967294, %s1267_s12  }
  0x10   : > { %s37_s15 = sadd.s32 1, %s1259_s10  ;;  %s40_s16 = sadd.s32 1, %s1263_s11 }
  0x11   : > { %p38_p0 = scmp.ge.s32.totalorder %s37_s15, 2  ;;  %p185_p1 = scmp.ne.s32.totalorder %s1247_s29, %s1243_s28 }
  0x12   : > { %p186_p2 = scmp.eq.s32.totalorder %s1621_s13, 3  ;;  %p191_p5 = scmp.ne.s32.totalorder %s1243_s28, %s1239_s27 }
  0x13   : > { %s1654_s15 = smov (%p38_p0, %s37_s15), 0  ;;  %s1656_s16 = smov (!%p38_p0, %s40_s16), %s1263_s11 }
  0x14   : > { %1634 = sst [smem:[#allocation14_spill]] %s1654_s15  ;;  %s171_s17 = ssub.s32 %s1259_s10, %s1654_s15 }
  0x15   : > { %p1374_p3 = por %p186_p2, %p185_p1  ;;  %p42_p4 = scmp.ge.s32.totalorder %s1656_s16, 2 }
  0x16   : > { %p192_p6 = scmp.eq.s32.totalorder %s1620_s14, 3  ;;  %p954_p7 = scmp.ge.s32.totalorder %s1267_s12, 1 }
  0x17   : > { %s1658_s16 = smov (%p42_p4, %s1656_s16), 0  ;;  %p311_p9 = scmp.lt.s32.totalorder %s1267_s12, 5 }
  0x18   : > { %1636 = sst [smem:[#allocation15_spill]] %s1658_s16  ;;  %p1385_p8 = por %p192_p6, %p191_p5 }
  0x19   : > { %s170_s20 = ssub.s32 %s1263_s11, %s1658_s16  ;;  %s175_s21 = sadd.s32 1, %s1247_s29 }
  0x1a   : > { %s172_s22 = sor.u32 %s171_s17, %s170_s20  ;;  %p312_p10 = pnand %p954_p7, %p311_p9 }
  0x1b   : > { %p173_p11 = scmp.eq.s32.totalorder %s172_s22, 0  ;;  %p379_p12 = scmp.lt.s32.totalorder (!%p312_p10), %s1255_s9, 1 }
  0x1c   : > { %315 = sbr.rel (%p312_p10) target bundleno = 396 (0x18c), region = 32  ;;  %p381_p13 = scmp.lt.s32.totalorder (!%p312_p10), %s1251_s30, 1 }
  0x1d   : > { %s1394_s23 = scalar_select %p173_p11, %s1247_s29, %s175_s21  }
  0x1e   : > { %s1638_s1 = sld [smem:[#allocation17_spill]] (!%p312_p10)  ;;  %s1271_s13 = smov (!%p312_p10), 124  }
  0x1f   : > { %s1639_s2 = sld [smem:[#allocation18_spill]] (!%p312_p10) }
  0x20   : > { %s1640_s0 = sld [smem:[#allocation16_spill]] (!%p312_p10) }
  0x21   : > { %vm410_vm0 = vcmask 1043456   ;;  %v1269_v1 = vmov 0.0   ;;  %s380_s22 = scalar_select %p379_p12, %s1255_s9, 1  ;;  %vm1270_vm1 = vmmov 0   ;;  %vm406_vm2 = vcmask 97280  }
  0x22   : > { %988 = vmatprep.subr.mxu0 %v1269_v1  ;;  %995 = vmatprep.subr.mxu1 %v1269_v1  ;;  %s382_s14 = scalar_select %p381_p13, %s1251_s30, 1  ;;  %vm508_vm3 = vcmask 31744   ;;  %vm487_vm4 = vcmask 64512   ;;  %vm485_vm5 = vcmask 60416  }
  0x23   : > { %992 = vmatprep.mubr.msk.f32.mxu0 %vm1270_vm1, %v1269_v1  ;;  %s959_s24 = sshll.u32 %s380_s22, 1  ;;  %997 = vmatprep.mubr.msk.f32.mxu1 %vm1270_vm1, %v1269_v1  ;;  %s1641_s3 = sld [smem:[#allocation19_spill]] }
  0x24   : > { %v405_v0 = vld [vmem:[%s1638_s1 + $0x8] sm:$0xf]  ;;  %v404_v2 = vld [vmem:[%s1638_s1] sm:$0xff]  ;;  %s1409_s25 = sadd.s32 %s959_s24, %s382_s14 }
  0x25   : > { %v505_v3 = vld [vmem:[%s1639_s2] sm:$0xf]  ;;  %989 = vmatpush3.msk.msra.mxu0 %vm410_vm0, %v405_v0  ;;  %s960_s26 = sshll.u32 %s1409_s25, 3  ;;  %s1622_s14 = sshll.u32 %s1409_s25, 2 }
  0x26   : > { %990 = vmatprep.subr.mxu0 %v1269_v1  ;;  %996 = vmatpush3.msk.msra.mxu1 %vm410_vm0, %v505_v3  ;;  %s386_s21 = scalar_lea.vmem %s1640_s0, %s960_s26  ;;  %s973_s26 = sshll.u32 %s1255_s9, 1 }
  0x27   : > { %991 = vmatpush3.msra.mxu0 %v404_v2  ;;  %v403_v4 = vld [vmem:[%s386_s21] sm:$0xff]  ;;  %s652_s20 = sadd.s32 %s1251_s30, %s973_s26  ;;  %s1642_s9 = sadd.s32 4294967295, %s1267_s12  }
  0x28   : > { %506 = vrot.lane.b32.xlu0 %v403_v4, %s1271_s13  ;;  %993 = vmatmul.mubr.msk.f32.vlgmr.msra.gmra.mxu0 %vm406_vm2, %v403_v4  ;;  %s1423_s13 = sand.u32 1, %s1243_s28   ;;  %s1432_s21 = sshll.u32 %s652_s20, 7 }
  0x29   : > { %s394_s1 = scalar_lea.vmem %s1641_s3, %s1622_s14  ;;  %s1429_s17 = sshll.u32 %s1423_s13, 3 }
  0x2a   : > { %s1437_s24 = sand.u32 1, %s1642_s9   ;;  %s1623_s14 = scalar_lea.vmem [#allocation4], %s1429_s17 }
  0x2b   : > { %s671_s0 = sshll.u32 %s1623_s14, 4  ;;  %s1446_s20 = scalar_lea.hbm %s1616_s5, %s1432_s21  ;;  %s1456_s0 = int_to_ptr.vmem [resolvable:$true] %s671_s0 }
  0x2c   : > { %s1454_s9 = scalar_lea.hbm %s1617_s6, %s1432_s21  ;;  %s620_s14 = scalar_lea.sflag [#allocation3], %s1423_s13 }
  0x2d   : > { %s1272_s30 = smov [#allocation2]  }
  0x2e   : > { %s1093_s26 = sshll.u32 %s1272_s30, 4  ;;  %s1094_s26 = int_to_ptr.vmem [resolvable:$false] %s1093_s26 }
  0x2f   : > { %s1095_s15 = scalar_lea.vmem %s1094_s26, 256 }
  0x9a   : > { %v507_v5 = vpop.permute.xlu0 %506 }
  0x9b   : > { %998 = vmatmul.mubr.msk.f32.vlgmr.msra.gmra.mxu1 %vm508_vm3, %v507_v5 }
  0xe8   : > { %v480_v6 = vpop.f32.mrf.mxu0 }
  0xe9   : > { %v484_v7 = vpack.c.bf16 %v480_v6, %v480_v6  ;;  %v488_v8 = vsel %vm487_vm4, %v480_v6, 0.0  ;;  %v496_v9 = vmul.f32 %v480_v6, %v480_v6 }
  0xea   : > { %v489_v10 = vrot.slane %v488_v8, 4  ;;  %v994_v11 = vpop.f32.mrf.mxu0 }
  0xeb   : > { %486 = vst.msk [vmem:[%s394_s1] sm:$0xf] %vm485_vm5, %v484_v7  ;;  %v497_v12 = vsel %vm487_vm4, %v496_v9, 0.0  ;;  %s357_s1 = scalar_lea.vmem [#allocation2], %s1429_s17 }
  0xec   : > { %v490_v13 = vadd.f32 %v489_v10, %v488_v8  ;;  %v498_v14 = vrot.slane %v497_v12, 4  ;;  %s656_s22 = sshll.u32 %s357_s1, 4  ;;  %s1448_s22 = int_to_ptr.vmem [resolvable:$true] %s656_s22 }
  0xed   : > { %s1089_s16 = scalar_lea.vmem %s1448_s22, 128  ;;  %p1096_p4 = scmp.lt.s32.totalorder %s1448_s22, %s1094_s26 }
  0xee   : > { %v491_v15 = vrot.slane %v490_v13, 2  ;;  %v499_v16 = vadd.f32 %v498_v14, %v497_v12  ;;  %p1090_p0 = scmp.ne.s32.totalorder %s1448_s22, %s1089_s16  ;;  %p1097_p5 = scmp.lt.s32.totalorder %s1095_s15, %s1089_s16 }
  0xf0   : > { %v492_v17 = vadd.f32 %v491_v15, %v490_v13  ;;  %v500_v18 = vrot.slane %v499_v16, 2  ;;  %p1091_p1 = pnand %p1090_p0, %p1374_p3  ;;  %p1098_p6 = por %p1097_p5, %p1096_p4 }
  0xf2   : > { %v493_v19 = vrot.slane %v492_v17, 1  ;;  %v501_v20 = vadd.f32 %v500_v18, %v499_v16  ;;  %p1092_p2 = pneg %p1091_p1 }
  0xf4   : > { %v502_v21 = vrot.slane %v501_v20, 1  ;;  %v494_v22 = vadd.f32 %v493_v19, %v492_v17  ;;  %p1099_p7 = pnand %p1098_p6, %p1092_p2 }
  0xf6   : > { %v503_v23 = vadd.f32 %v502_v21, %v501_v20  ;;  %495 = vst.msk [vmem:[%s357_s1] sm:$0xff] %vm487_vm4, %v494_v22 }
  0xf7   : > { %1102 = shalt.err (!%p1099_p7)
}
  0xf8   : > { %s1103_s2 = scalar_lea.hbm %s1446_s20, 128  ;;  %s1107_s30 = scalar_lea.hbm %s1616_s5, 512 }
  0xf9   : > { %p1104_p9 = scmp.ne.s32.totalorder %s1446_s20, %s1103_s2  ;;  %p1108_p12 = scmp.lt.s32.totalorder %s1446_s20, %s1616_s5 }
  0xfa   : > { %p1109_p13 = scmp.lt.s32.totalorder %s1107_s30, %s1103_s2 }
  0xfb   : > { %p1105_p10 = pnand %p1104_p9, %p1374_p3 }
  0xfc   : > { %p1110_p0 = por %p1109_p13, %p1108_p12 }
  0xfd   : > { %p1106_p11 = pneg %p1105_p10 }
  0xff   : > { %p1111_p1 = pnand %p1110_p0, %p1106_p11 }
 0x101   : > { %1114 = shalt.err (!%p1111_p1)
}
 0x102   : > { %1000 = dma.vmem_to_hbm [thread:$0]  (%p1374_p3), %s1448_s22, 128, %s1446_s20, %s620_s14  }
 0x103   : > { %s1643_s15 = scalar_lea.vmem [#allocation4], %s1429_s17  ;;  %s625_s10 = scalar_lea.sflag [#allocation5], %s1437_s24 }
 0x104   : > { %504 = vst.msk [vmem:[%s1643_s15] sm:$0xff] %vm487_vm4, %v503_v23  ;;  %s1115_s11 = scalar_lea.vmem %s1456_s0, 128  ;;  %s1273_s16 = smov [#allocation4]  }
 0x105   : > { %p1116_p2 = scmp.ne.s32.totalorder %s1456_s0, %s1115_s11  ;;  %s1119_s26 = sshll.u32 %s1273_s16, 4  ;;  %s1120_s26 = int_to_ptr.vmem [resolvable:$false] %s1119_s26 }
 0x106   : > { %s1121_s2 = scalar_lea.vmem %s1120_s26, 256  ;;  %p1122_p6 = scmp.lt.s32.totalorder %s1456_s0, %s1120_s26 }
 0x107   : > { %p1117_p4 = pnand %p1116_p2, %p1374_p3  ;;  %p1123_p7 = scmp.lt.s32.totalorder %s1121_s2, %s1115_s11 }
 0x109   : > { %p1118_p5 = pneg %p1117_p4  ;;  %p1124_p9 = por %p1123_p7, %p1122_p6 }
 0x10b   : > { %p1125_p10 = pnand %p1124_p9, %p1118_p5 }
 0x10d   : > { %1128 = shalt.err (!%p1125_p10)
}
 0x10e   : > { %s1129_s14 = scalar_lea.hbm %s1454_s9, 128  ;;  %s1133_s3 = scalar_lea.hbm %s1617_s6, 512 }
 0x10f   : > { %p1130_p11 = scmp.ne.s32.totalorder %s1454_s9, %s1129_s14  ;;  %p1134_p0 = scmp.lt.s32.totalorder %s1454_s9, %s1617_s6 }
 0x110   : > { %p1135_p1 = scmp.lt.s32.totalorder %s1133_s3, %s1129_s14 }
 0x111   : > { %p1131_p12 = pnand %p1130_p11, %p1374_p3 }
 0x112   : > { %p1136_p2 = por %p1135_p1, %p1134_p0 }
 0x113   : > { %p1132_p13 = pneg %p1131_p12 }
 0x115   : > { %p1137_p4 = pnand %p1136_p2, %p1132_p13 }
 0x117   : > { %1140 = shalt.err (!%p1137_p4)
}
 0x118   : > { %1001 = dma.vmem_to_hbm [thread:$0]  (%p1374_p3), %s1456_s0, 128, %s1454_s9, %s625_s10  }
 0x119   : > { %s1644_s15 = sshll.u32 %s1409_s25, 2  ;;  %s371_s0 = scalar_lea.vmem [#allocation6], %s1429_s17 }
 0x11a   : > { %s402_s26 = scalar_lea.vmem %s1615_s4, %s1644_s15  ;;  %s686_s25 = sshll.u32 %s371_s0, 4  ;;  %s1524_s25 = int_to_ptr.vmem [resolvable:$true] %s686_s25 }
 0x11b   : > { %s378_s9 = scalar_lea.vmem [#allocation7], %s1429_s17  ;;  %s1522_s20 = scalar_lea.hbm %s1618_s7, %s1432_s21 }
 0x11c   : > { %s701_s2 = sshll.u32 %s378_s9, 4  ;;  %s1531_s30 = scalar_lea.hbm %s1619_s8, %s1432_s21  ;;  %s1533_s2 = int_to_ptr.vmem [resolvable:$true] %s701_s2 }
 0x11d   : > { %s1141_s15 = scalar_lea.vmem %s1524_s25, 128  ;;  %s1274_s11 = smov [#allocation6]  }
 0x11e   : > { %p1142_p5 = scmp.ne.s32.totalorder %s1524_s25, %s1141_s15  ;;  %s1145_s16 = sshll.u32 %s1274_s11, 4  ;;  %s1146_s16 = int_to_ptr.vmem [resolvable:$false] %s1145_s16 }
 0x11f   : > { %p1148_p9 = scmp.lt.s32.totalorder %s1524_s25, %s1146_s16 }
 0x120   : > { %p1143_p6 = pnand %p1142_p5, %p1374_p3 }
 0x122   : > { %p1144_p7 = pneg %p1143_p6 }
 0x15b   : > { %v580_v24 = vpop.f32.mrf.mxu1 }
 0x15c   : > { %v584_v25 = vpack.c.bf16 %v580_v24, %v580_v24  ;;  %v586_v26 = vsel %vm487_vm4, %v580_v24, 0.0  ;;  %v594_v27 = vmul.f32 %v580_v24, %v580_v24 }
 0x15d   : > { %v587_v28 = vrot.slane %v586_v26, 4  ;;  %v999_v29 = vpop.f32.mrf.mxu1 }
 0x15e   : > { %585 = vst.msk [vmem:[%s402_s26] sm:$0xf] %vm485_vm5, %v584_v25  ;;  %v595_v30 = vsel %vm487_vm4, %v594_v27, 0.0  ;;  %s1147_s26 = scalar_lea.vmem %s1146_s16, 256 }
 0x15f   : > { %v588_v31 = vadd.f32 %v587_v28, %v586_v26  ;;  %v596_v32 = vrot.slane %v595_v30, 4  ;;  %p1149_p10 = scmp.lt.s32.totalorder %s1147_s26, %s1141_s15 }
 0x161   : > { %v589_v33 = vrot.slane %v588_v31, 2  ;;  %v597_v34 = vadd.f32 %v596_v32, %v595_v30  ;;  %p1150_p11 = por %p1149_p10, %p1148_p9 }
 0x163   : > { %v590_v35 = vadd.f32 %v589_v33, %v588_v31  ;;  %v598_v36 = vrot.slane %v597_v34, 2  ;;  %p1151_p12 = pnand %p1150_p11, %p1144_p7 }
 0x165   : > { %v591_v37 = vrot.slane %v590_v35, 1  ;;  %v599_v38 = vadd.f32 %v598_v36, %v597_v34 }
 0x167   : > { %v592_v39 = vadd.f32 %v591_v37, %v590_v35  ;;  %v600_v40 = vrot.slane %v599_v38, 1 }
 0x169   : > { %593 = vst.msk [vmem:[%s371_s0] sm:$0xff] %vm487_vm4, %v592_v39  ;;  %v601_v41 = vadd.f32 %v600_v40, %v599_v38 }
 0x16a   : > { %1154 = shalt.err (!%p1151_p12)
}
 0x16b   : > { %s1155_s21 = scalar_lea.hbm %s1522_s20, 128  ;;  %s1159_s22 = scalar_lea.hbm %s1618_s7, 512 }
 0x16c   : > { %p1156_p13 = scmp.ne.s32.totalorder %s1522_s20, %s1155_s21  ;;  %p1160_p2 = scmp.lt.s32.totalorder %s1522_s20, %s1618_s7 }
 0x16d   : > { %p1161_p4 = scmp.lt.s32.totalorder %s1159_s22, %s1155_s21 }
 0x16e   : > { %p1157_p0 = pnand %p1156_p13, %p1374_p3 }
 0x16f   : > { %p1162_p5 = por %p1161_p4, %p1160_p2 }
 0x170   : > { %p1158_p1 = pneg %p1157_p0 }
 0x172   : > { %p1163_p6 = pnand %p1162_p5, %p1158_p1 }
 0x174   : > { %1166 = shalt.err (!%p1163_p6)
}
 0x175   : > { %1002 = dma.vmem_to_hbm [thread:$0]  (%p1374_p3), %s1524_s25, 128, %s1522_s20, %s625_s10   ;;  %602 = vst.msk [vmem:[%s378_s9] sm:$0xff] %vm487_vm4, %v601_v41 }
 0x176   : > { %s635_s15 = scalar_lea.sflag [#allocation8], %s1423_s13  ;;  %s1167_s11 = scalar_lea.vmem %s1533_s2, 128 }
 0x177   : > { %p1168_p7 = scmp.ne.s32.totalorder %s1533_s2, %s1167_s11  ;;  %s1275_s16 = smov [#allocation7]  }
 0x178   : > { %s1171_s24 = sshll.u32 %s1275_s16, 4  ;;  %s1172_s24 = int_to_ptr.vmem [resolvable:$false] %s1171_s24 }
 0x179   : > { %p1169_p9 = pnand %p1168_p7, %p1374_p3  ;;  %s1173_s26 = scalar_lea.vmem %s1172_s24, 256 }
 0x17a   : > { %p1174_p11 = scmp.lt.s32.totalorder %s1533_s2, %s1172_s24  ;;  %p1175_p12 = scmp.lt.s32.totalorder %s1173_s26, %s1167_s11 }
 0x17b   : > { %p1170_p10 = pneg %p1169_p9 }
 0x17c   : > { %p1176_p13 = por %p1175_p12, %p1174_p11 }
 0x17e   : > { %p1177_p0 = pnand %p1176_p13, %p1170_p10 }
 0x180   : > { %1180 = shalt.err (!%p1177_p0)
}
 0x181   : > { %s1181_s17 = scalar_lea.hbm %s1531_s30, 128  ;;  %s1185_s25 = scalar_lea.hbm %s1619_s8, 512 }
 0x182   : > { %p1182_p1 = scmp.ne.s32.totalorder %s1531_s30, %s1181_s17  ;;  %p1186_p5 = scmp.lt.s32.totalorder %s1531_s30, %s1619_s8 }
 0x183   : > { %p1187_p6 = scmp.lt.s32.totalorder %s1185_s25, %s1181_s17 }
 0x184   : > { %p1183_p2 = pnand %p1182_p1, %p1374_p3 }
 0x185   : > { %p1188_p7 = por %p1187_p6, %p1186_p5 }
 0x186   : > { %p1184_p4 = pneg %p1183_p2 }
 0x188   : > { %p1189_p9 = pnand %p1188_p7, %p1184_p4 }
 0x18a   : > { %1192 = shalt.err (!%p1189_p9)
}
 0x18b   : > { %1003 = dma.vmem_to_hbm [thread:$0]  (%p1374_p3), %s1533_s2, 128, %s1531_s30, %s635_s15  }
 0x18c PF: > { %p1021_p10 = scmp.ge.s32.totalorder %s1267_s12, 2  ;;  %s735_s21 = sand.u32 1, %s1239_s27  }
 0x18d   : > { %s736_s0 = scalar_lea.sflag [#allocation3], %s735_s21 }
 0x18e   : > { %p1009_p11 = pnand %p1021_p10, %p1385_p8 }
 0x190   : > { %p1010_p12 = pneg %p1009_p11 }
 0x192   : > { %1226 = dma.done.wait (%p1010_p12), %s736_s0, 128  }
 0x193   : > { %1228 = vsyncadd (%p1010_p12), %s736_s0, 4294967168  ;;  %s1645_s14 = sadd.s32 4294967294, %s1267_s12  }
 0x194   : > { %s744_s22 = sand.u32 1, %s1645_s14  }
 0x195   : > { %s745_s3 = scalar_lea.sflag [#allocation5], %s744_s22 }
 0x196   : > { %1230 = dma.done.wait (%p1010_p12), %s745_s3, 256  }
 0x197   : > { %1232 = vsyncadd (%p1010_p12), %s745_s3, 4294967040  ;;  %s763_s18 = scalar_lea.sflag [#allocation8], %s735_s21 }
 0x198   : > { %1234 = dma.done.wait (%p1010_p12), %s763_s18, 128  }
 0x199   : > { %1236 = vsyncadd (%p1010_p12), %s763_s18, 4294967168  ;;  %s28_s12 = sadd.s32 1, %s1267_s12   ;;  %s1646_s30 = sld [smem:[#allocation12_spill]] }
 0x19a   : > { %p25_p3 = scmp.ge.s32.totalorder %s28_s12, 6   ;;  %s1647_s9 = sld [smem:[#allocation13_spill]] }
 0x19b   : > { %s1648_s10 = sld [smem:[#allocation14_spill]]  ;;  %s1650_s27 = smov %s1243_s28 }
 0x19c   : > { %s1649_s11 = sld [smem:[#allocation15_spill]]  ;;  %s1651_s28 = smov %s1247_s29 }
 0x19d   : > { %s1652_s29 = smov %s1394_s23  ;;  %27 = sbr.rel (!%p25_p3) target bundleno = 14 (0xe), region = 140 }
 0x1a2   :  { %768 = vsyncpa [#allocation3], 1 }
 0x1a3   :  { %770 = vsyncpa [#allocation3 + $0x1], 1 }
 0x1a4   :  { %771 = vsyncpa [#allocation5], 1 }
 0x1a5   :  { %773 = vsyncpa [#allocation5 + $0x1], 1 }
 0x1a6   :  { %774 = vsyncpa [#allocation8], 1 }
 0x1a7   :  { %776 = vsyncpa [#allocation8 + $0x1], 1 }

</bundles_post_ra>
